<compile_context>
chip_gen: v7x
topology: tpu7x:2x2x1
jax: 0.10.0
libtpu: 0.0.40
codegen_flags: <defaults>
</compile_context>

<pallas_src>
import jax
import jax.numpy as jnp
from jax.experimental import pallas as pl
from jax.experimental.pallas import tpu as pltpu


def _out_conv_kernel(x_ref, w_ref, b_ref, o_ref):
    # x_ref: (nb, Cin, ts), w_ref: (Cout, Cin), b_ref: (Cout, 1),
    # o_ref: (nb, Cout, ts).  bf16 operands -> single MXU pass, f32 accumulate.
    w = w_ref[...].astype(jnp.bfloat16)
    b = b_ref[...]
    nb = x_ref.shape[0]
    for i in range(nb):  # nb is a small static constant; unrolled at trace time
        o_ref[i] = (
            jnp.dot(w, x_ref[i].astype(jnp.bfloat16),
                    preferred_element_type=jnp.float32)
            + b
        ).astype(o_ref.dtype)


def out_conv_pallas(x, weight, bias, *, spatial_tile=65536):
    """1x1x1 Conv3d (OutConv.forward).

    x:      (N, Cin, D, H, W) float32
    weight: (Cout, Cin, 1, 1, 1) or (Cout, Cin) float32
    bias:   (Cout,) float32
    returns (N, Cout, D, H, W) float32
    """
    N, Cin, D, H, W = x.shape
    w2 = weight.reshape(weight.shape[0], Cin).astype(jnp.float32)
    Cout = w2.shape[0]
    S = D * H * W

    # ---- choose the spatial tile ts ------------------------------------
    # Keep double-buffered in+out tiles under ~20 MiB even for large Cin.
    vmem_tile_budget = 20 * 1024 * 1024
    ts_cap_by_vmem = max(128, vmem_tile_budget // (2 * 4 * (Cin + Cout)))
    target = max(128, min(spatial_tile, ts_cap_by_vmem))
    target = (target // 128) * 128

    if S % 128 == 0:
        Sp = S
    else:
        # Ragged tail fallback: pad + slice (extra HBM traffic); only hit for
        # volumes whose voxel count is not a multiple of 128.
        Sp = pl.cdiv(S, 128) * 128

    base = Sp // 128
    # Largest ts (multiple of 128) that divides Sp and does not exceed target.
    tsb = max(1, min(target // 128, base))
    while base % tsb != 0:
        tsb -= 1
    # Keep >= 2 parallel grid steps for dual-TensorCore v7x when possible.
    if N * (base // tsb) < 2 and base >= 2:
        tsb = base // 2
        while base % tsb != 0:
            tsb -= 1
    ts = tsb * 128
    n_spatial = Sp // ts

    # ---- optional batch blocking for small volumes / large batch --------
    nb = 1
    if n_spatial == 1 and N > 1:
        per_sample_bytes = (Cin + Cout) * ts * 4
        nb = max(1, min(N // 2, (4 * 1024 * 1024) // max(per_sample_bytes, 1)))
        while N % nb != 0:
            nb -= 1
        nb = max(nb, 1)

    # ---- prepare operands ------------------------------------------------
    xs = x.reshape(N, Cin, S).astype(jnp.float32)  # free view when layouts match
    if Sp != S:
        xs = jnp.pad(xs, ((0, 0), (0, 0), (0, Sp - S)))
    b2 = bias.reshape(Cout, 1).astype(jnp.float32)

    # VMEM limit sized from actual need (+ slack), capped well under v7x's
    # 64 MiB physical per-TC VMEM.
    need = 2 * nb * (Cin + Cout) * ts * 4 + (Cout * Cin + Cout) * 4
    vmem_limit = int(min(max(need + (4 << 20), 16 << 20), 48 << 20))

    out = pl.pallas_call(
        _out_conv_kernel,
        out_shape=jax.ShapeDtypeStruct((N, Cout, Sp), jnp.float32),
        grid=(N // nb, n_spatial),
        in_specs=[
            pl.BlockSpec((nb, Cin, ts), lambda n, s: (n, 0, s)),
            pl.BlockSpec((Cout, Cin), lambda n, s: (0, 0)),   # resident weight
            pl.BlockSpec((Cout, 1), lambda n, s: (0, 0)),     # resident bias
        ],
        out_specs=pl.BlockSpec((nb, Cout, ts), lambda n, s: (n, 0, s)),
        compiler_params=pltpu.CompilerParams(
            dimension_semantics=("parallel", "parallel"),
            vmem_limit_bytes=vmem_limit,
        ),
    )(xs, w2, b2)

    if Sp != S:
        # NOTE: padded tail holds bias values (W@0 + b), must be sliced off.
        out = out[:, :, :S]
    return out.reshape(N, Cout, D, H, W)


def out_conv_reference(x, weight, bias):
    w2 = weight.reshape(weight.shape[0], x.shape[1]).astype(jnp.float32)
    out = jnp.einsum("ncdhw,oc->nodhw", x, w2)
    return out + bias[None, :, None, None, None]


if __name__ == "__main__":
    # OutConv(in_channels=16, out_channels=4); batch 2, 16^3 volume.
    N, Cin, Cout = 2, 16, 4
    D = H = W = 16

    key = jax.random.PRNGKey(0)
    kx, kw, kb = jax.random.split(key, 3)
    x = jax.random.normal(kx, (N, Cin, D, H, W), jnp.float32)
    weight = jax.random.normal(kw, (Cout, Cin, 1, 1, 1), jnp.float32) * 0.1
    bias = jax.random.normal(kb, (Cout,), jnp.float32) * 0.1

    out = jax.jit(out_conv_pallas)(x, weight, bias)
    out = jax.block_until_ready(out)

    ref = out_conv_reference(x, weight, bias)
    max_err = float(jnp.max(jnp.abs(out - ref)))
    assert out.shape == (N, Cout, D, H, W), out.shape
    # bf16 MXU path with f32 accumulation over a 16-deep reduction: expect
    # max abs error in the few-1e-3 range.
    assert max_err < 3e-2, f"mismatch vs reference: {max_err}"

    print("KERNEL_OK")
</pallas_src>

<mosaic_0001>
module attributes {stable_mosaic.version = 11 : i64} {
  func.func @_out_conv_kernel(%arg0: i32, %arg1: i32, %arg2: memref<1x16x4096xf32, #tpu.memory_space<vmem>>, %arg3: memref<4x16xf32, #tpu.memory_space<vmem>>, %arg4: memref<4x1xf32, #tpu.memory_space<vmem>>, %arg5: memref<1x4x4096xf32, #tpu.memory_space<vmem>>) attributes {dimension_semantics = [#tpu.dimension_semantics<parallel>, #tpu.dimension_semantics<parallel>], iteration_bounds = array<i64: 2, 1>, scalar_prefetch = 0 : i64, scratch_operands = 0 : i64, tpu.core_type = #tpu.core_type<tc>, window_params = [{transform_indices = @transform_0, window_bounds = array<i64: 1, 16, 4096>}, {pipeline_mode = #tpu.pipeline_mode<synchronous>, transform_indices = @transform_1, window_bounds = array<i64: 4, 16>}, {pipeline_mode = #tpu.pipeline_mode<synchronous>, transform_indices = @transform_2, window_bounds = array<i64: 4, 1>}, {transform_indices = @transform_3, window_bounds = array<i64: 1, 4, 4096>}]} {
    %c0 = arith.constant 0 : index
    %c0_0 = arith.constant 0 : index
    %0 = vector.load %arg3[%c0, %c0_0] : memref<4x16xf32, #tpu.memory_space<vmem>>, vector<4x16xf32>
    %1 = arith.truncf %0 : vector<4x16xf32> to vector<4x16xbf16>
    %c0_1 = arith.constant 0 : index
    %c0_2 = arith.constant 0 : index
    %2 = vector.load %arg4[%c0_1, %c0_2] : memref<4x1xf32, #tpu.memory_space<vmem>>, vector<4x1xf32>
    %c0_3 = arith.constant 0 : index
    %c0_4 = arith.constant 0 : index
    %c0_5 = arith.constant 0 : index
    %3 = vector.load %arg2[%c0_3, %c0_4, %c0_5] : memref<1x16x4096xf32, #tpu.memory_space<vmem>>, vector<1x16x4096xf32>
    %4 = vector.shape_cast %3 : vector<1x16x4096xf32> to vector<16x4096xf32>
    %5 = arith.truncf %4 : vector<16x4096xf32> to vector<16x4096xbf16>
    %cst = arith.constant dense<0.000000e+00> : vector<4x4096xf32>
    %6 = tpu.matmul %1, %5, %cst {dimension_numbers = #tpu.dot_dimension_numbers<[1], [0], [0], [1], [0, 0, 1, 1], [], []>} : vector<4x16xbf16>, vector<16x4096xbf16>, vector<4x4096xf32> -> vector<4x4096xf32>
    %7 = vector.broadcast %2 : vector<4x1xf32> to vector<4x4096xf32>
    %8 = arith.addf %6, %7 : vector<4x4096xf32>
    %c0_6 = arith.constant 0 : index
    %c0_7 = arith.constant 0 : index
    %c0_8 = arith.constant 0 : index
    %9 = vector.load %arg5[%c0_6, %c0_7, %c0_8] : memref<1x4x4096xf32, #tpu.memory_space<vmem>>, vector<1x4x4096xf32>
    %10 = vector.shape_cast %9 : vector<1x4x4096xf32> to vector<4x4096xf32>
    %11 = vector.shape_cast %8 : vector<4x4096xf32> to vector<1x4x4096xf32>
    tpu.vector_store %arg5[%c0_6, %c0_7, %c0_8], %11 {strides = array<i32>} : memref<1x4x4096xf32, #tpu.memory_space<vmem>>, vector<1x4x4096xf32>,
    return
  }
  func.func @transform_0(%arg0: i32, %arg1: i32) -> (i32, i32, i32) {
    %c0_i32 = arith.constant 0 : i32
    %c0_i32_0 = arith.constant 0 : i32
    return %arg0, %c0_i32, %arg1 : i32, i32, i32
  }
  func.func @transform_1(%arg0: i32, %arg1: i32) -> (i32, i32) {
    %c0_i32 = arith.constant 0 : i32
    %c0_i32_0 = arith.constant 0 : i32
    %c0_i32_1 = arith.constant 0 : i32
    return %c0_i32, %c0_i32_0 : i32, i32
  }
  func.func @transform_2(%arg0: i32, %arg1: i32) -> (i32, i32) {
    %c0_i32 = arith.constant 0 : i32
    %c0_i32_0 = arith.constant 0 : i32
    %c0_i32_1 = arith.constant 0 : i32
    return %c0_i32, %c0_i32_0 : i32, i32
  }
  func.func @transform_3(%arg0: i32, %arg1: i32) -> (i32, i32, i32) {
    %c0_i32 = arith.constant 0 : i32
    %c0_i32_0 = arith.constant 0 : i32
    return %arg0, %c0_i32, %arg1 : i32, i32, i32
  }
}

</mosaic_0001>

<bundles_post_ra>
// kernel: out_conv_pallas.1
= control target key start
LH: loop header
LB: loop body
LE: loop exit
PB: predicated region body
PF: predicated region fallthrough
CT: control target
= control target key end

     0   :  { %s1242_s12 = smov 0   ;;  %s1244_s13 = smov 0   ;;  %s1454_s0 = inlined_call_operand.vmem [shape: f32[2,16,4096], index: 0, kind: input, shape index: {}]   ;;  %s1455_s1 = inlined_call_operand.vmem [shape: f32[4,16], index: 1, kind: input, shape index: {}]   ;;  %s1456_s2 = inlined_call_operand.vmem [shape: f32[4,1], index: 2, kind: input, shape index: {}]   ;;  %s1457_s3 = inlined_call_operand.vmem [shape: f32[2,4,4096], index: 3, kind: output, shape index: {}]  }
   0x1   :  { %s1246_s14 = smov 0  }
   0x2 LB: > { %s25_s15 = sadd.s32 1, %s1215_s13  ;;  %p1146_p0 = scmp.ge.s32.totalorder %s1219_s14, 1  ;;  %s1219_s14 = sphi %s1246_s14, %s13_s14   ;;  %s1215_s13 = sphi %s1244_s13, %s1459_s13   ;;  %s1211_s12 = sphi %s1242_s12, %s1458_s12  }
   0x3   : > { %p27_p1 = scmp.ge.s32.totalorder %s25_s15, 2  ;;  %p158_p2 = scmp.lt.s32.totalorder %s1219_s14, 3 }
   0x5   : > { %s1461_s15 = smov (%p27_p1, %s25_s15), 0  ;;  %p159_p3 = pnand %p1146_p0, %p158_p2 }
   0x6   : > { %p191_p4 = scmp.lt.s32.totalorder (!%p159_p3), %s1211_s12, 1  ;;  %v1221_v0 = vmov (!%p159_p3), 0   ;;  %v213_v1 = vld [vmem:[%s1456_s2] sm:$0xf] (!%p159_p3)  ;;  %vm315_vm0 = vcmask (!%p159_p3), 130048  }
   0x7   : > { %162 = sbr.rel (%p159_p3) target bundleno = 300 (0x12c), region = 32  ;;  %351 = vmatprep.mubr.bf16.mxu0 (!%p159_p3), %v1221_v0  ;;  %392 = vmatprep.mubr.bf16.mxu1 (!%p159_p3), %v1221_v0  ;;  %v211_v2 = vld [vmem:[%s1455_s1] sm:$0xf] (!%p159_p3) }
   0x8   : > { %1196 = vset.pattern.permute.xlu0 (!%p159_p3), %v1221_v0  ;;  %v1286_v16 = vpack.c.bf16 (!%p159_p3), %v211_v2, %v211_v2 }
   0x9   : > { %312 = vperm.xlu0 (!%p159_p3), %1196, %v213_v1  }
   0xe   : > { %s1463_s12 = smov (!%p191_p4, %s1211_s12), 1 }
   0xf   : > { %s1169_s18 = sshll.u32 %s1463_s12, 9  ;;  %s1170_s24 = sshll.u32 %s1463_s12, 7 }
  0x10   : > { %s1272_s21 = scalar_lea.vmem %s1454_s0, %s1169_s18  ;;  %s1398_s27 = scalar_lea.vmem %s1457_s3, %s1170_s24 }
  0x11   : > { %v215_v3 = vld [vmem:[%s1272_s21 + $0x8] sm:$0xff]  ;;  %v217_v5 = vld [vmem:[%s1272_s21 + $0x18] sm:$0xff]  ;;  %v214_v8 = vld [vmem:[%s1272_s21] sm:$0xff] }
  0x12   : > { %v247_v4 = vld [vmem:[%s1272_s21 + $0x108] sm:$0xff]  ;;  %v249_v7 = vld [vmem:[%s1272_s21 + $0x118] sm:$0xff]  ;;  %v246_v9 = vld [vmem:[%s1272_s21 + $0x100] sm:$0xff] }
  0x13   : > { %v279_v6 = vpack.c.bf16 %v247_v4, %v215_v3  ;;  %v281_v10 = vpack.c.bf16 %v249_v7, %v217_v5  ;;  %v278_v11 = vpack.c.bf16 %v246_v9, %v214_v8  ;;  %v216_v12 = vld [vmem:[%s1272_s21 + $0x10] sm:$0xff]  ;;  %v219_v14 = vld [vmem:[%s1272_s21 + $0x28] sm:$0xff]  ;;  %v221_v18 = vld [vmem:[%s1272_s21 + $0x38] sm:$0xff] }
  0x14   : > { %v248_v13 = vld [vmem:[%s1272_s21 + $0x110] sm:$0xff]  ;;  %v251_v17 = vld [vmem:[%s1272_s21 + $0x128] sm:$0xff]  ;;  %v253_v19 = vld [vmem:[%s1272_s21 + $0x138] sm:$0xff] }
  0x15   : > { %319 = vmatprep.subr.bf16.mxu0 %v279_v6  ;;  %v280_v15 = vpack.c.bf16 %v248_v13, %v216_v12  ;;  %360 = vmatprep.subr.bf16.mxu1 %v281_v10  ;;  %v283_v20 = vpack.c.bf16 %v251_v17, %v219_v14  ;;  %v285_v21 = vpack.c.bf16 %v253_v19, %v221_v18  ;;  %v218_v22 = vld [vmem:[%s1272_s21 + $0x20] sm:$0xff]  ;;  %v220_v24 = vld [vmem:[%s1272_s21 + $0x30] sm:$0xff]  ;;  %v223_v27 = vld [vmem:[%s1272_s21 + $0x48] sm:$0xff] }
  0x16   : > { %320 = vmatpush1.bf16.msra.mxu0 %v278_v11  ;;  %v250_v23 = vld [vmem:[%s1272_s21 + $0x120] sm:$0xff]  ;;  %v252_v26 = vld [vmem:[%s1272_s21 + $0x130] sm:$0xff]  ;;  %v255_v28 = vld [vmem:[%s1272_s21 + $0x148] sm:$0xff] }
  0x17   : > { %361 = vmatpush1.bf16.msra.mxu1 %v280_v15  ;;  %v282_v25 = vpack.c.bf16 %v250_v23, %v218_v22  ;;  %401 = vmatprep.subr.bf16.mxu0 %v283_v20  ;;  %v284_v29 = vpack.c.bf16 %v252_v26, %v220_v24  ;;  %v287_v30 = vpack.c.bf16 %v255_v28, %v223_v27  ;;  %v225_v31 = vld [vmem:[%s1272_s21 + $0x58] sm:$0xff]  ;;  %v222_v34 = vld [vmem:[%s1272_s21 + $0x40] sm:$0xff]  ;;  %v224_v36 = vld [vmem:[%s1272_s21 + $0x50] sm:$0xff] }
  0x18   : > { %442 = vmatprep.subr.bf16.mxu1 %v285_v21  ;;  %v257_v32 = vld [vmem:[%s1272_s21 + $0x158] sm:$0xff]  ;;  %v254_v35 = vld [vmem:[%s1272_s21 + $0x140] sm:$0xff]  ;;  %v256_v37 = vld [vmem:[%s1272_s21 + $0x150] sm:$0xff] }
  0x19   : > { %1151 = vmatmul.mubr.msk.bf16.vlgmr.msra.gmra.mrb[0].mxu0 %vm315_vm0, %v1286_v16  ;;  %v289_v33 = vpack.c.bf16 %v257_v32, %v225_v31  ;;  %v227_v38 = vld [vmem:[%s1272_s21 + $0x68] sm:$0xff]  ;;  %v286_v40 = vpack.c.bf16 %v254_v35, %v222_v34  ;;  %v229_v41 = vld [vmem:[%s1272_s21 + $0x78] sm:$0xff]  ;;  %v288_v43 = vpack.c.bf16 %v256_v37, %v224_v36  ;;  %v226_v46 = vld [vmem:[%s1272_s21 + $0x60] sm:$0xff] }
  0x1a   : > { %1152 = vmatmul.mubr.msk.bf16.vlgmr.msra.gmra.mrb[0].mxu1 %vm315_vm0, %v1286_v16  ;;  %402 = vmatpush1.bf16.msra.mxu0 %v282_v25  ;;  %v259_v39 = vld [vmem:[%s1272_s21 + $0x168] sm:$0xff]  ;;  %v261_v42 = vld [vmem:[%s1272_s21 + $0x178] sm:$0xff]  ;;  %v258_v47 = vld [vmem:[%s1272_s21 + $0x160] sm:$0xff] }
  0x1b   : > { %443 = vmatpush1.bf16.msra.mxu1 %v284_v29  ;;  %433 = vmatprep.mubr.bf16.mxu0 %v1221_v0  ;;  %v291_v44 = vpack.c.bf16 %v259_v39, %v227_v38  ;;  %v293_v45 = vpack.c.bf16 %v261_v42, %v229_v41  ;;  %v228_v48 = vld [vmem:[%s1272_s21 + $0x70] sm:$0xff]  ;;  %v231_v50 = vld [vmem:[%s1272_s21 + $0x88] sm:$0xff]  ;;  %v290_v52 = vpack.c.bf16 %v258_v47, %v226_v46  ;;  %v233_v53 = vld [vmem:[%s1272_s21 + $0x98] sm:$0xff] }
  0x1c   : > { %474 = vmatprep.mubr.bf16.mxu1 %v1221_v0  ;;  %483 = vmatprep.subr.bf16.mxu0 %v287_v30  ;;  %v260_v49 = vld [vmem:[%s1272_s21 + $0x170] sm:$0xff]  ;;  %v263_v51 = vld [vmem:[%s1272_s21 + $0x188] sm:$0xff]  ;;  %v265_v54 = vld [vmem:[%s1272_s21 + $0x198] sm:$0xff] }
  0x1d   : > { %524 = vmatprep.subr.bf16.mxu1 %v289_v33  ;;  %v292_v55 = vpack.c.bf16 %v260_v49, %v228_v48  ;;  %v295_v56 = vpack.c.bf16 %v263_v51, %v231_v50  ;;  %v297_v57 = vpack.c.bf16 %v265_v54, %v233_v53  ;;  %v230_v58 = vld [vmem:[%s1272_s21 + $0x80] sm:$0xff]  ;;  %v232_v60 = vld [vmem:[%s1272_s21 + $0x90] sm:$0xff]  ;;  %v235_v62 = vld [vmem:[%s1272_s21 + $0xa8] sm:$0xff] }
  0x1e   : > { %v262_v59 = vld [vmem:[%s1272_s21 + $0x180] sm:$0xff]  ;;  %v264_v61 = vld [vmem:[%s1272_s21 + $0x190] sm:$0xff]  ;;  %v267_v63 = vld [vmem:[%s1272_s21 + $0x1a8] sm:$0xff] }
  0x1f   : > { %v294_v1 = vpack.c.bf16 %v262_v59, %v230_v58  ;;  %v237_v2 = vld [vmem:[%s1272_s21 + $0xb8] sm:$0xff]  ;;  %v296_v4 = vpack.c.bf16 %v264_v61, %v232_v60  ;;  %v299_v5 = vpack.c.bf16 %v267_v63, %v235_v62  ;;  %v234_v7 = vld [vmem:[%s1272_s21 + $0xa0] sm:$0xff]  ;;  %v236_v9 = vld [vmem:[%s1272_s21 + $0xb0] sm:$0xff] }
  0x20   : > { %v269_v3 = vld [vmem:[%s1272_s21 + $0x1b8] sm:$0xff]  ;;  %v266_v8 = vld [vmem:[%s1272_s21 + $0x1a0] sm:$0xff]  ;;  %v268_v10 = vld [vmem:[%s1272_s21 + $0x1b0] sm:$0xff] }
  0x21   : > { %1153 = vmatmul.mubr.msk.bf16.vlgmr.msra.gmra.mrb[4].mxu0 %vm315_vm0, %v1286_v16  ;;  %v301_v6 = vpack.c.bf16 %v269_v3, %v237_v2  ;;  %v239_v11 = vld [vmem:[%s1272_s21 + $0xc8] sm:$0xff]  ;;  %v298_v13 = vpack.c.bf16 %v266_v8, %v234_v7  ;;  %v241_v14 = vld [vmem:[%s1272_s21 + $0xd8] sm:$0xff]  ;;  %v300_v17 = vpack.c.bf16 %v268_v10, %v236_v9  ;;  %v238_v20 = vld [vmem:[%s1272_s21 + $0xc0] sm:$0xff] }
  0x22   : > { %1154 = vmatmul.mubr.msk.bf16.vlgmr.msra.gmra.mrb[4].mxu1 %vm315_vm0, %v1286_v16  ;;  %484 = vmatpush1.bf16.msra.mxu0 %v286_v40  ;;  %v271_v12 = vld [vmem:[%s1272_s21 + $0x1c8] sm:$0xff]  ;;  %v273_v15 = vld [vmem:[%s1272_s21 + $0x1d8] sm:$0xff]  ;;  %v270_v21 = vld [vmem:[%s1272_s21 + $0x1c0] sm:$0xff] }
  0x23   : > { %525 = vmatpush1.bf16.msra.mxu1 %v288_v43  ;;  %515 = vmatprep.mubr.bf16.mxu0 %v1221_v0  ;;  %v303_v18 = vpack.c.bf16 %v271_v12, %v239_v11  ;;  %v305_v19 = vpack.c.bf16 %v273_v15, %v241_v14  ;;  %v240_v22 = vld [vmem:[%s1272_s21 + $0xd0] sm:$0xff]  ;;  %v243_v24 = vld [vmem:[%s1272_s21 + $0xe8] sm:$0xff]  ;;  %v302_v26 = vpack.c.bf16 %v270_v21, %v238_v20  ;;  %v245_v27 = vld [vmem:[%s1272_s21 + $0xf8] sm:$0xff] }
  0x24   : > { %556 = vmatprep.mubr.bf16.mxu1 %v1221_v0  ;;  %565 = vmatprep.subr.bf16.mxu0 %v291_v44  ;;  %v272_v23 = vld [vmem:[%s1272_s21 + $0x1d0] sm:$0xff]  ;;  %v275_v25 = vld [vmem:[%s1272_s21 + $0x1e8] sm:$0xff]  ;;  %v277_v28 = vld [vmem:[%s1272_s21 + $0x1f8] sm:$0xff] }
  0x25   : > { %606 = vmatprep.subr.bf16.mxu1 %v293_v45  ;;  %v304_v29 = vpack.c.bf16 %v272_v23, %v240_v22  ;;  %v307_v30 = vpack.c.bf16 %v275_v25, %v243_v24  ;;  %v309_v31 = vpack.c.bf16 %v277_v28, %v245_v27  ;;  %v242_v32 = vld [vmem:[%s1272_s21 + $0xe0] sm:$0xff]  ;;  %v244_v34 = vld [vmem:[%s1272_s21 + $0xf0] sm:$0xff] }
  0x26   : > { %v274_v33 = vld [vmem:[%s1272_s21 + $0x1e0] sm:$0xff]  ;;  %v276_v35 = vld [vmem:[%s1272_s21 + $0x1f0] sm:$0xff] }
  0x27   : > { %v306_v36 = vpack.c.bf16 %v274_v33, %v242_v32  ;;  %v308_v37 = vpack.c.bf16 %v276_v35, %v244_v34 }
  0x29   : > { %1155 = vmatmul.mubr.msk.bf16.vlgmr.msra.gmra.mrb[8].mxu0 %vm315_vm0, %v1286_v16 }
  0x2a   : > { %1156 = vmatmul.mubr.msk.bf16.vlgmr.msra.gmra.mrb[8].mxu1 %vm315_vm0, %v1286_v16  ;;  %566 = vmatpush1.bf16.msra.mxu0 %v290_v52 }
  0x2b   : > { %607 = vmatpush1.bf16.msra.mxu1 %v292_v55  ;;  %597 = vmatprep.mubr.bf16.mxu0 %v1221_v0 }
  0x2c   : > { %638 = vmatprep.mubr.bf16.mxu1 %v1221_v0  ;;  %647 = vmatprep.subr.bf16.mxu0 %v295_v56 }
  0x2d   : > { %688 = vmatprep.subr.bf16.mxu1 %v297_v57 }
  0x31   : > { %1157 = vmatmul.mubr.msk.bf16.vlgmr.msra.gmra.mrb[12].mxu0 %vm315_vm0, %v1286_v16 }
  0x32   : > { %1158 = vmatmul.mubr.msk.bf16.vlgmr.msra.gmra.mrb[12].mxu1 %vm315_vm0, %v1286_v16  ;;  %648 = vmatpush1.bf16.msra.mxu0 %v294_v1 }
  0x33   : > { %689 = vmatpush1.bf16.msra.mxu1 %v296_v4  ;;  %679 = vmatprep.mubr.bf16.mxu0 %v1221_v0 }
  0x34   : > { %720 = vmatprep.mubr.bf16.mxu1 %v1221_v0  ;;  %729 = vmatprep.subr.bf16.mxu0 %v299_v5 }
  0x35   : > { %770 = vmatprep.subr.bf16.mxu1 %v301_v6 }
  0x39   : > { %1159 = vmatmul.mubr.msk.bf16.vlgmr.msra.gmra.mrb[16].mxu0 %vm315_vm0, %v1286_v16 }
  0x3a   : > { %1160 = vmatmul.mubr.msk.bf16.vlgmr.msra.gmra.mrb[16].mxu1 %vm315_vm0, %v1286_v16  ;;  %730 = vmatpush1.bf16.msra.mxu0 %v298_v13 }
  0x3b   : > { %771 = vmatpush1.bf16.msra.mxu1 %v300_v17  ;;  %761 = vmatprep.mubr.bf16.mxu0 %v1221_v0 }
  0x3c   : > { %802 = vmatprep.mubr.bf16.mxu1 %v1221_v0  ;;  %811 = vmatprep.subr.bf16.mxu0 %v303_v18 }
  0x3d   : > { %852 = vmatprep.subr.bf16.mxu1 %v305_v19 }
  0x41   : > { %1161 = vmatmul.mubr.msk.bf16.vlgmr.msra.gmra.mrb[20].mxu0 %vm315_vm0, %v1286_v16 }
  0x42   : > { %1162 = vmatmul.mubr.msk.bf16.vlgmr.msra.gmra.mrb[20].mxu1 %vm315_vm0, %v1286_v16  ;;  %812 = vmatpush1.bf16.msra.mxu0 %v302_v26 }
  0x43   : > { %853 = vmatpush1.bf16.msra.mxu1 %v304_v29  ;;  %843 = vmatprep.mubr.bf16.mxu0 %v1221_v0 }
  0x44   : > { %884 = vmatprep.mubr.bf16.mxu1 %v1221_v0  ;;  %893 = vmatprep.subr.bf16.mxu0 %v307_v30 }
  0x45   : > { %934 = vmatprep.subr.bf16.mxu1 %v309_v31 }
  0x49   : > { %1163 = vmatmul.mubr.msk.bf16.vlgmr.msra.gmra.mrb[24].mxu0 %vm315_vm0, %v1286_v16 }
  0x4a   : > { %1164 = vmatmul.mubr.msk.bf16.vlgmr.msra.gmra.mrb[24].mxu1 %vm315_vm0, %v1286_v16  ;;  %894 = vmatpush1.bf16.msra.mxu0 %v306_v36 }
  0x4b   : > { %935 = vmatpush1.bf16.msra.mxu1 %v308_v37  ;;  %925 = vmatprep.mubr.bf16.mxu0 %v1221_v0 }
  0x4c   : > { %966 = vmatprep.mubr.bf16.mxu1 %v1221_v0 }
  0x51   : > { %1165 = vmatmul.mubr.msk.bf16.vlgmr.msra.gmra.mrb[28].mxu0 %vm315_vm0, %v1286_v16 }
  0x52   : > { %1166 = vmatmul.mubr.msk.bf16.vlgmr.msra.gmra.mrb[28].mxu1 %vm315_vm0, %v1286_v16 }
  0x88   : > { %v1389_v38 = vpop.permute.xlu0 %312 }
  0xec   : > { %v353_v39 = vpop.f32.mrb[0].mxu0 }
  0xed   : > { %v394_v40 = vpop.f32.mrb[0].mxu1  ;;  %v354_v41 = vadd.f32 %v353_v39, %v1389_v38  ;;  %v355_v42 = vpop.f32.mrb[1].mxu0 }
  0xee   : > { %v356_v43 = vadd.f32 %v355_v42, %v1389_v38  ;;  %v395_v44 = vadd.f32 %v394_v40, %v1389_v38  ;;  %v396_v45 = vpop.f32.mrb[1].mxu1  ;;  %v357_v0 = vpop.f32.mrb[2].mxu0 }
  0xef   : > { %v397_v16 = vadd.f32 %v396_v45, %v1389_v38  ;;  %v398_v46 = vpop.f32.mrb[2].mxu1  ;;  %v358_v47 = vpop.f32.mrb[3].mxu0 }
  0xf0   : > { %v1007_v48 = vcombine.low %v354_v41, %v356_v43  ;;  %v399_v49 = vpop.f32.mrb[3].mxu1 }
  0xf1   : > { %v1008_v50 = vcombine.low %v395_v44, %v397_v16 }
  0xf2   : > { %1039 = vst [vmem:[%s1398_s27] sm:$0xff] %v1007_v48 }
  0xf3   : > { %1040 = vst [vmem:[%s1398_s27 + $0x8] sm:$0xff] %v1008_v50 }
  0xf4   : > { %v435_v51 = vpop.f32.mrb[4].mxu0 }
  0xf5   : > { %v436_v52 = vadd.f32 %v435_v51, %v1389_v38  ;;  %v476_v53 = vpop.f32.mrb[4].mxu1  ;;  %v437_v54 = vpop.f32.mrb[5].mxu0 }
  0xf6   : > { %v477_v55 = vadd.f32 %v476_v53, %v1389_v38  ;;  %v438_v56 = vadd.f32 %v437_v54, %v1389_v38  ;;  %v478_v57 = vpop.f32.mrb[5].mxu1  ;;  %v439_v58 = vpop.f32.mrb[6].mxu0 }
  0xf7   : > { %v479_v59 = vadd.f32 %v478_v57, %v1389_v38  ;;  %v480_v60 = vpop.f32.mrb[6].mxu1  ;;  %v440_v61 = vpop.f32.mrb[7].mxu0 }
  0xf8   : > { %v1009_v62 = vcombine.low %v436_v52, %v438_v56  ;;  %v481_v63 = vpop.f32.mrb[7].mxu1 }
  0xf9   : > { %v1010_v1 = vcombine.low %v477_v55, %v479_v59 }
  0xfa   : > { %1041 = vst [vmem:[%s1398_s27 + $0x10] sm:$0xff] %v1009_v62 }
  0xfb   : > { %1042 = vst [vmem:[%s1398_s27 + $0x18] sm:$0xff] %v1010_v1 }
  0xfc   : > { %v517_v2 = vpop.f32.mrb[8].mxu0 }
  0xfd   : > { %v518_v3 = vadd.f32 %v517_v2, %v1389_v38  ;;  %v558_v4 = vpop.f32.mrb[8].mxu1  ;;  %v519_v5 = vpop.f32.mrb[9].mxu0 }
  0xfe   : > { %v559_v6 = vadd.f32 %v558_v4, %v1389_v38  ;;  %v520_v7 = vadd.f32 %v519_v5, %v1389_v38  ;;  %v560_v8 = vpop.f32.mrb[9].mxu1  ;;  %v521_v9 = vpop.f32.mrb[10].mxu0 }
  0xff   : > { %v561_v10 = vadd.f32 %v560_v8, %v1389_v38  ;;  %v562_v11 = vpop.f32.mrb[10].mxu1  ;;  %v522_v12 = vpop.f32.mrb[11].mxu0 }
 0x100   : > { %v1011_v13 = vcombine.low %v518_v3, %v520_v7  ;;  %v563_v14 = vpop.f32.mrb[11].mxu1 }
 0x101   : > { %v1012_v15 = vcombine.low %v559_v6, %v561_v10 }
 0x102   : > { %1043 = vst [vmem:[%s1398_s27 + $0x20] sm:$0xff] %v1011_v13 }
 0x103   : > { %1044 = vst [vmem:[%s1398_s27 + $0x28] sm:$0xff] %v1012_v15 }
 0x104   : > { %v599_v17 = vpop.f32.mrb[12].mxu0 }
 0x105   : > { %v600_v18 = vadd.f32 %v599_v17, %v1389_v38  ;;  %v640_v19 = vpop.f32.mrb[12].mxu1  ;;  %v601_v20 = vpop.f32.mrb[13].mxu0 }
 0x106   : > { %v641_v21 = vadd.f32 %v640_v19, %v1389_v38  ;;  %v602_v22 = vadd.f32 %v601_v20, %v1389_v38  ;;  %v642_v23 = vpop.f32.mrb[13].mxu1  ;;  %v603_v24 = vpop.f32.mrb[14].mxu0 }
 0x107   : > { %v643_v25 = vadd.f32 %v642_v23, %v1389_v38  ;;  %v644_v26 = vpop.f32.mrb[14].mxu1  ;;  %v604_v27 = vpop.f32.mrb[15].mxu0 }
 0x108   : > { %v1013_v28 = vcombine.low %v600_v18, %v602_v22  ;;  %v645_v29 = vpop.f32.mrb[15].mxu1 }
 0x109   : > { %v1014_v30 = vcombine.low %v641_v21, %v643_v25 }
 0x10a   : > { %1045 = vst [vmem:[%s1398_s27 + $0x30] sm:$0xff] %v1013_v28 }
 0x10b   : > { %1046 = vst [vmem:[%s1398_s27 + $0x38] sm:$0xff] %v1014_v30 }
 0x10c   : > { %v681_v31 = vpop.f32.mrb[16].mxu0 }
 0x10d   : > { %v682_v32 = vadd.f32 %v681_v31, %v1389_v38  ;;  %v722_v33 = vpop.f32.mrb[16].mxu1  ;;  %v683_v34 = vpop.f32.mrb[17].mxu0 }
 0x10e   : > { %v723_v35 = vadd.f32 %v722_v33, %v1389_v38  ;;  %v684_v36 = vadd.f32 %v683_v34, %v1389_v38  ;;  %v724_v37 = vpop.f32.mrb[17].mxu1  ;;  %v685_v39 = vpop.f32.mrb[18].mxu0 }
 0x10f   : > { %v725_v40 = vadd.f32 %v724_v37, %v1389_v38  ;;  %v726_v41 = vpop.f32.mrb[18].mxu1  ;;  %v686_v42 = vpop.f32.mrb[19].mxu0 }
 0x110   : > { %v1015_v43 = vcombine.low %v682_v32, %v684_v36  ;;  %v727_v44 = vpop.f32.mrb[19].mxu1 }
 0x111   : > { %v1016_v45 = vcombine.low %v723_v35, %v725_v40 }
 0x112   : > { %1047 = vst [vmem:[%s1398_s27 + $0x40] sm:$0xff] %v1015_v43 }
 0x113   : > { %1048 = vst [vmem:[%s1398_s27 + $0x48] sm:$0xff] %v1016_v45 }
 0x114   : > { %v763_v0 = vpop.f32.mrb[20].mxu0 }
 0x115   : > { %v764_v16 = vadd.f32 %v763_v0, %v1389_v38  ;;  %v804_v46 = vpop.f32.mrb[20].mxu1  ;;  %v765_v47 = vpop.f32.mrb[21].mxu0 }
 0x116   : > { %v805_v48 = vadd.f32 %v804_v46, %v1389_v38  ;;  %v766_v49 = vadd.f32 %v765_v47, %v1389_v38  ;;  %v806_v50 = vpop.f32.mrb[21].mxu1  ;;  %v767_v51 = vpop.f32.mrb[22].mxu0 }
 0x117   : > { %v807_v52 = vadd.f32 %v806_v50, %v1389_v38  ;;  %v808_v53 = vpop.f32.mrb[22].mxu1  ;;  %v768_v54 = vpop.f32.mrb[23].mxu0 }
 0x118   : > { %v1017_v55 = vcombine.low %v764_v16, %v766_v49  ;;  %v809_v56 = vpop.f32.mrb[23].mxu1 }
 0x119   : > { %v1018_v57 = vcombine.low %v805_v48, %v807_v52 }
 0x11a   : > { %1049 = vst [vmem:[%s1398_s27 + $0x50] sm:$0xff] %v1017_v55 }
 0x11b   : > { %1050 = vst [vmem:[%s1398_s27 + $0x58] sm:$0xff] %v1018_v57 }
 0x11c   : > { %v845_v58 = vpop.f32.mrb[24].mxu0 }
 0x11d   : > { %v846_v59 = vadd.f32 %v845_v58, %v1389_v38  ;;  %v886_v60 = vpop.f32.mrb[24].mxu1  ;;  %v847_v61 = vpop.f32.mrb[25].mxu0 }
 0x11e   : > { %v887_v62 = vadd.f32 %v886_v60, %v1389_v38  ;;  %v848_v63 = vadd.f32 %v847_v61, %v1389_v38  ;;  %v888_v1 = vpop.f32.mrb[25].mxu1  ;;  %v849_v2 = vpop.f32.mrb[26].mxu0 }
 0x11f   : > { %v889_v3 = vadd.f32 %v888_v1, %v1389_v38  ;;  %v890_v4 = vpop.f32.mrb[26].mxu1  ;;  %v850_v5 = vpop.f32.mrb[27].mxu0 }
 0x120   : > { %v1019_v6 = vcombine.low %v846_v59, %v848_v63  ;;  %v891_v7 = vpop.f32.mrb[27].mxu1 }
 0x121   : > { %v1020_v8 = vcombine.low %v887_v62, %v889_v3 }
 0x122   : > { %1051 = vst [vmem:[%s1398_s27 + $0x60] sm:$0xff] %v1019_v6 }
 0x123   : > { %1052 = vst [vmem:[%s1398_s27 + $0x68] sm:$0xff] %v1020_v8 }
 0x124   : > { %v927_v9 = vpop.f32.mrb[28].mxu0 }
 0x125   : > { %v928_v10 = vadd.f32 %v927_v9, %v1389_v38  ;;  %v968_v11 = vpop.f32.mrb[28].mxu1  ;;  %v929_v12 = vpop.f32.mrb[29].mxu0 }
 0x126   : > { %v969_v13 = vadd.f32 %v968_v11, %v1389_v38  ;;  %v930_v14 = vadd.f32 %v929_v12, %v1389_v38  ;;  %v970_v15 = vpop.f32.mrb[29].mxu1  ;;  %v931_v17 = vpop.f32.mrb[30].mxu0 }
 0x127   : > { %v971_v18 = vadd.f32 %v970_v15, %v1389_v38  ;;  %v972_v19 = vpop.f32.mrb[30].mxu1  ;;  %v932_v20 = vpop.f32.mrb[31].mxu0 }
 0x128   : > { %v1021_v21 = vcombine.low %v928_v10, %v930_v14  ;;  %v973_v22 = vpop.f32.mrb[31].mxu1 }
 0x129   : > { %v1022_v23 = vcombine.low %v969_v13, %v971_v18 }
 0x12a   : > { %1053 = vst [vmem:[%s1398_s27 + $0x70] sm:$0xff] %v1021_v21 }
 0x12b   : > { %1054 = vst [vmem:[%s1398_s27 + $0x78] sm:$0xff] %v1022_v23 }
 0x12c PF: > { %s13_s14 = sadd.s32 1, %s1219_s14   ;;  %s1458_s12 = smov %s1215_s13 }
 0x12d   : > { %p10_p5 = scmp.ge.s32.totalorder %s13_s14, 4   ;;  %s1459_s13 = smov %s1461_s15 }
 0x12f   :  { %12 = sbr.rel (!%p10_p5) target bundleno = 2 (0x2), region = 62 }

</bundles_post_ra>
